<compile_context>
chip_gen: v5e
topology: v5e:2x2
jax: 0.10.0
libtpu: 0.0.40
codegen_flags: <defaults>
</compile_context>

<pallas_src>
import functools

import jax
import jax.numpy as jnp
from jax.experimental import pallas as pl
from jax.experimental.pallas import tpu as pltpu

_LANE = 128


def _bn1d_train_kernel(x_ref, o_ref, *, eps, n):
    # One (N, TILE_C) column slab resident in VMEM; reduce over the batch (sublane) axis.
    x = x_ref[...].astype(jnp.float32)
    mean = jnp.sum(x, axis=0, keepdims=True) * (1.0 / n)                    # (1, TILE_C)
    centered = x - mean
    var = jnp.sum(centered * centered, axis=0, keepdims=True) * (1.0 / n)   # biased var
    inv_std = jax.lax.rsqrt(var + eps)                                      # EUP rsqrt
    o_ref[...] = (centered * inv_std).astype(o_ref.dtype)


def _bn1d_denorm_kernel(x_ref, scale_ref, shift_ref, o_ref):
    # y = x * sqrt(running_var) + running_mean, with sqrt hoisted to the wrapper.
    x = x_ref[...].astype(jnp.float32)
    o_ref[...] = (x * scale_ref[...] + shift_ref[...]).astype(o_ref.dtype)


def _pick_tile_c(n, c_padded):
    """Largest lane-multiple tile so that double-buffered f32 in+out slabs fit ~16 MiB."""
    # 2 (double-buffer) * 2 (in + out) * N * TILE_C * 4 B  <=  16 MiB
    budget_elems = (16 * 1024 * 1024) // 16
    max_tile = max(budget_elems // max(n, 1), _LANE)
    max_tile = (max_tile // _LANE) * _LANE
    tile = min(max(max_tile, _LANE), 2048, c_padded)
    # c_padded is a multiple of _LANE; shrink tile until it divides c_padded evenly.
    while c_padded % tile != 0:
        tile -= _LANE
    return max(tile, _LANE)


def normalization_bn1d(x, running_mean, running_var, *, normalize=True, eps=1e-9):
    """Pallas implementation of NormalizationBN1D.forward for (N, C) inputs."""
    n, c = x.shape
    c_padded = ((c + _LANE - 1) // _LANE) * _LANE
    tile_c = _pick_tile_c(n, c_padded)
    grid = (c_padded // tile_c,)

    # Pad the feature axis to a multiple of 128 so every output block is lane-dense
    # (unmasked full-lane stores); padded columns are sliced off afterwards.
    x_p = x if c_padded == c else jnp.pad(x, ((0, 0), (0, c_padded - c)))

    compiler_params = pltpu.CompilerParams(
        dimension_semantics=("parallel",),           # megacore sharding on v7x
        vmem_limit_bytes=48 * 1024 * 1024,           # safe below v7x's 64 MiB physical
    )

    if normalize:
        # TODO(synk): for very large N a full (N, tile_c) column may exceed VMEM; that
        # case needs a (C_tiles, N_tiles) grid accumulating sum / sum-of-squares in
        # scratch (two-pass moments), which is not required at these shapes.
        kernel = functools.partial(_bn1d_train_kernel, eps=eps, n=float(n))
        out = pl.pallas_call(
            kernel,
            out_shape=jax.ShapeDtypeStruct((n, c_padded), x.dtype),
            grid=grid,
            in_specs=[pl.BlockSpec((n, tile_c), lambda j: (0, j))],
            out_specs=pl.BlockSpec((n, tile_c), lambda j: (0, j)),
            compiler_params=compiler_params,
        )(x_p)
    else:
        scale = jnp.sqrt(running_var.astype(jnp.float32)).reshape(1, c)
        shift = running_mean.astype(jnp.float32).reshape(1, c)
        if c_padded != c:
            scale = jnp.pad(scale, ((0, 0), (0, c_padded - c)), constant_values=1.0)
            shift = jnp.pad(shift, ((0, 0), (0, c_padded - c)))
        out = pl.pallas_call(
            _bn1d_denorm_kernel,
            out_shape=jax.ShapeDtypeStruct((n, c_padded), x.dtype),
            grid=grid,
            in_specs=[
                pl.BlockSpec((n, tile_c), lambda j: (0, j)),
                pl.BlockSpec((1, tile_c), lambda j: (0, j)),
                pl.BlockSpec((1, tile_c), lambda j: (0, j)),
            ],
            out_specs=pl.BlockSpec((n, tile_c), lambda j: (0, j)),
            compiler_params=compiler_params,
        )(x_p, scale, shift)

    return out if c_padded == c else out[:, :c]


def _reference(x, running_mean, running_var, normalize=True, eps=1e-9):
    x32 = x.astype(jnp.float32)
    if normalize:
        mean = jnp.mean(x32, axis=0, keepdims=True)
        var = jnp.mean((x32 - mean) ** 2, axis=0, keepdims=True)   # biased (training mode)
        return ((x32 - mean) / jnp.sqrt(var + eps)).astype(x.dtype)
    else:
        return (x32 * jnp.sqrt(running_var)[None, :] + running_mean[None, :]).astype(x.dtype)


if __name__ == "__main__":
    key = jax.random.PRNGKey(0)
    batch, num_features = 8, 32
    x = jax.random.normal(key, (batch, num_features), dtype=jnp.float32) * 3.0 + 1.5

    # Deterministic BatchNorm1d buffers (fresh-module defaults).
    running_mean = jnp.zeros((num_features,), dtype=jnp.float32)
    running_var = jnp.ones((num_features,), dtype=jnp.float32)

    # normalize=True path (training-mode batch norm).
    y = normalization_bn1d(x, running_mean, running_var, normalize=True)
    jax.block_until_ready(y)
    y_ref = _reference(x, running_mean, running_var, normalize=True)
    assert y.shape == x.shape
    assert jnp.allclose(y, y_ref, atol=1e-5, rtol=1e-5), "normalize=True mismatch"

    # normalize=False path (de-normalization with running stats).
    z = normalization_bn1d(x, running_mean, running_var, normalize=False)
    jax.block_until_ready(z)
    z_ref = _reference(x, running_mean, running_var, normalize=False)
    assert z.shape == x.shape
    assert jnp.allclose(z, z_ref, atol=1e-5, rtol=1e-5), "normalize=False mismatch"

    print("KERNEL_OK")
</pallas_src>

<mosaic_0001>
module attributes {stable_mosaic.version = 11 : i64} {
  func.func @_bn1d_train_kernel(%arg0: i32, %arg1: memref<8x128xf32, #tpu.memory_space<vmem>>, %arg2: memref<8x128xf32, #tpu.memory_space<vmem>>) attributes {dimension_semantics = [#tpu.dimension_semantics<parallel>], iteration_bounds = array<i64: 1>, scalar_prefetch = 0 : i64, scratch_operands = 0 : i64, tpu.core_type = #tpu.core_type<tc>, window_params = [{transform_indices = @transform_0, window_bounds = array<i64: 8, 128>}, {transform_indices = @transform_1, window_bounds = array<i64: 8, 128>}]} {
    %c0 = arith.constant 0 : index
    %c0_0 = arith.constant 0 : index
    %0 = vector.load %arg1[%c0, %c0_0] : memref<8x128xf32, #tpu.memory_space<vmem>>, vector<8x128xf32>
    %cst = arith.constant dense<0.000000e+00> : vector<128xf32>
    %1 = vector.multi_reduction <add>, %0, %cst [0] : vector<8x128xf32> to vector<128xf32>
    %2 = vector.shape_cast %1 : vector<128xf32> to vector<1x128xf32>
    %cst_1 = arith.constant 1.250000e-01 : f32
    %3 = vector.broadcast %cst_1 : f32 to vector<1x128xf32>
    %4 = arith.mulf %2, %3 : vector<1x128xf32>
    %5 = vector.broadcast %4 : vector<1x128xf32> to vector<8x128xf32>
    %6 = arith.subf %0, %5 : vector<8x128xf32>
    %7 = arith.mulf %6, %6 : vector<8x128xf32>
    %cst_2 = arith.constant dense<0.000000e+00> : vector<128xf32>
    %8 = vector.multi_reduction <add>, %7, %cst_2 [0] : vector<8x128xf32> to vector<128xf32>
    %9 = vector.shape_cast %8 : vector<128xf32> to vector<1x128xf32>
    %cst_3 = arith.constant 1.250000e-01 : f32
    %10 = vector.broadcast %cst_3 : f32 to vector<1x128xf32>
    %11 = arith.mulf %9, %10 : vector<1x128xf32>
    %cst_4 = arith.constant 9.99999971E-10 : f32
    %12 = vector.broadcast %cst_4 : f32 to vector<1x128xf32>
    %13 = arith.addf %11, %12 : vector<1x128xf32>
    %14 = math.rsqrt %13 : vector<1x128xf32>
    %15 = vector.broadcast %14 : vector<1x128xf32> to vector<8x128xf32>
    %16 = arith.mulf %6, %15 : vector<8x128xf32>
    %c0_5 = arith.constant 0 : index
    %c0_6 = arith.constant 0 : index
    %17 = vector.load %arg2[%c0_5, %c0_6] : memref<8x128xf32, #tpu.memory_space<vmem>>, vector<8x128xf32>
    tpu.vector_store %arg2[%c0_5, %c0_6], %16 {strides = array<i32>} : memref<8x128xf32, #tpu.memory_space<vmem>>, vector<8x128xf32>,
    return
  }
  func.func @transform_0(%arg0: i32) -> (i32, i32) {
    %c0_i32 = arith.constant 0 : i32
    %c0_i32_0 = arith.constant 0 : i32
    return %c0_i32, %arg0 : i32, i32
  }
  func.func @transform_1(%arg0: i32) -> (i32, i32) {
    %c0_i32 = arith.constant 0 : i32
    %c0_i32_0 = arith.constant 0 : i32
    return %c0_i32, %arg0 : i32, i32
  }
}

</mosaic_0001>

<bundles_post_ra>
// kernel: tpu_custom_call.1
= control target key start
LH: loop header
LB: loop body
LE: loop exit
PB: predicated region body
PF: predicated region fallthrough
CT: control target
= control target key end

     0   :  { %6 = vsyncpa [#allocation3], 0  ;;  %s144_s0 = inlined_call_operand.hbm [shape: f32[8,128], index: 0, kind: input, shape index: {}]   ;;  %s145_s1 = inlined_call_operand.hbm [shape: f32[8,128], index: 1, kind: output, shape index: {}]  }
   0x1   :  { %7 = vsyncpa [#allocation4], 0  ;;  %s13_s8 = sshll.u32 %s144_s0, 4  ;;  %s126_s9 = smov [#allocation2]   ;;  %s14_s8 = int_to_ptr.hbm [resolvable:$true] %s13_s8 }
   0x2   :  { %s15_s10 = sshll.u32 %s126_s9, 4  ;;  %s16_s10 = int_to_ptr.vmem [resolvable:$true] %s15_s10 }
   0x3   :  { %18 = dma.hbm_to_vmem [thread:$0]  %s14_s8, 128, %s16_s10, [#allocation3]  }
   0x4   :  { %122 = dma.done.wait [#allocation3], 128  }
   0x5   :  { %123 = vsyncadd [#allocation3], 4294967168  ;;  %v23_v0 = vld [vmem:[#allocation2] sm:$0xff]  ;;  %s127_s0 = smov [#allocation5]   ;;  %s60_s14 = sshll.u32 %s145_s1, 4  ;;  %s61_s14 = int_to_ptr.hbm [resolvable:$true] %s60_s14 }
   0x6   :  { %v24_v1 = vrot.slane %v23_v0, 4  ;;  %s58_s11 = sshll.u32 %s127_s0, 4  ;;  %s59_s11 = int_to_ptr.vmem [resolvable:$true] %s58_s11 }
   0x8   :  { %v25_v2 = vadd.f32 %v24_v1, %v23_v0 }
   0xa   :  { %v26_v3 = vrot.slane %v25_v2, 2 }
   0xc   :  { %v27_v4 = vadd.f32 %v26_v3, %v25_v2 }
   0xe   :  { %v28_v5 = vrot.slane %v27_v4, 1 }
  0x10   :  { %v29_v6 = vadd.f32 %v28_v5, %v27_v4 }
  0x12   :  { %v30_v7 = vmul.f32 0.125, %v29_v6 }
  0x14   :  { %v31_v8 = vsub.f32 %v23_v0, %v30_v7 }
  0x16   :  { %v32_v9 = vmul.f32 %v31_v8, %v31_v8 }
  0x18   :  { %v33_v10 = vrot.slane %v32_v9, 4 }
  0x1a   :  { %v34_v11 = vadd.f32 %v33_v10, %v32_v9 }
  0x1c   :  { %v35_v12 = vrot.slane %v34_v11, 2 }
  0x1e   :  { %v36_v13 = vadd.f32 %v35_v12, %v34_v11 }
  0x20   :  { %v37_v14 = vrot.slane %v36_v13, 1 }
  0x22   :  { %v38_v15 = vadd.f32 %v37_v14, %v36_v13 }
  0x24   :  { %v39_v16 = vmul.f32 0.125, %v38_v15 }
  0x26   :  { %v40_v17 = vadd.f32 1e-09, %v39_v16 }
  0x28   :  { %72 = vrsqrt.f32 %v40_v17  ;;  %vm47_vm0 = vweird.f32 %v40_v17 }
  0x2e   :  { %v73_v18 = vpop.eup %72 }
  0x2f   :  { %v42_v19 = vmul.f32 %v73_v18, %v40_v17  ;;  %vm48_vm1 = vweird.f32 %v73_v18 }
  0x30   :  { %vm49_vm2 = vmor %vm47_vm0, %vm48_vm1 }
  0x31   :  { %v43_v20 = vmul.f32 %v73_v18, %v42_v19 }
  0x33   :  { %v44_v21 = vmul.f32 0.5, %v43_v20 }
  0x35   :  { %v45_v22 = vsub.f32 1.5, %v44_v21 }
  0x37   :  { %v46_v23 = vmul.f32 %v73_v18, %v45_v22 }
  0x39   :  { %v50_v24 = vsel %vm49_vm2, %v73_v18, %v46_v23 }
  0x3a   :  { %v51_v25 = vmul.f32 %v50_v24, %v31_v8 }
  0x3c   :  { %52 = vst [vmem:[#allocation5] sm:$0xff] %v51_v25 }
  0x3d   :  { %63 = dma.vmem_to_hbm [thread:$0]  %s59_s11, 128, %s61_s14, [#allocation4]  }
  0x3e   :  { %124 = dma.done.wait [#allocation4], 128  }
  0x3f   :  { %125 = vsyncadd [#allocation4], 4294967168 }
  0x40   :  { %68 = vsyncpa [#allocation3], 1 }
  0x41   :  { %69 = vsyncpa [#allocation4], 1 }

</bundles_post_ra>
